<compile_context>
chip_gen: v5e
topology: v5e:2x2
jax: 0.10.0
libtpu: 0.0.40
codegen_flags: <defaults>
</compile_context>

<pallas_src>
import jax
import jax.numpy as jnp
from jax.experimental import pallas as pl
from jax.experimental.pallas import tpu as pltpu


def _round_up(n, m):
    return ((n + m - 1) // m) * m


def _tpu_vmem_capacity_bytes():
    try:
        info = pltpu.get_tpu_info()
        cap = getattr(info, "vmem_capacity_bytes", None)
        if cap:
            return int(cap)
    except Exception:
        pass
    return 64 * 1024 * 1024  # conservative (v7x-sized) fallback


def _spec(shape, index_map, buffered=None):
    """BlockSpec helper; requests N-deep buffering when supported."""
    if buffered is not None:
        try:
            return pl.BlockSpec(shape, index_map,
                                pipeline_mode=pl.Buffered(buffered))
        except TypeError:  # older BlockSpec without pipeline_mode kwarg
            pass
    return pl.BlockSpec(shape, index_map)


# --------------------------------------------------------------------------
# Kernels
# --------------------------------------------------------------------------
def ffn_kernel(x_ref, w1_ref, b1_ref, w2_ref, b2_ref, g_ref, beta_ref, o_ref):
    """Resident-weight path: whole FFN + residual + LayerNorm per row tile."""
    x_in = x_ref[...]                       # (tm, d_model)
    cdt = w1_ref.dtype                      # matmul compute dtype (bf16/f32)

    # first linear + relu; rebind to the matmul dtype immediately so the f32
    # (tm, d_ff) buffer can retire before the second matmul.
    h = jnp.dot(x_in.astype(cdt), w1_ref[...],
                preferred_element_type=jnp.float32)
    h = jnp.maximum(h + b1_ref[...], 0.0).astype(cdt)

    # second linear
    out = jnp.dot(h, w2_ref[...], preferred_element_type=jnp.float32)
    out = out + b2_ref[...]

    # TODO(synk): dropout is identity (eval-mode semantics); training-mode
    # parity would need a pltpu.prng_seed/prng_random_bits mask.

    # residual + LayerNorm (two-pass variance, no cancellation)
    y = out + x_in.astype(jnp.float32)
    mean = jnp.mean(y, axis=-1, keepdims=True)
    cent = y - mean
    var = jnp.mean(cent * cent, axis=-1, keepdims=True)
    y_norm = cent * jax.lax.rsqrt(var + 1e-5)
    o_ref[...] = (y_norm * g_ref[...] + beta_ref[...]).astype(o_ref.dtype)


def ffn_kernel_chunked(x_ref, w1_ref, b1_ref, w2_ref, b2_ref, g_ref, beta_ref,
                       o_ref, acc_ref):
    """d_ff-chunked path: grid = (row tiles, d_ff chunks); f32 accumulator."""
    k = pl.program_id(1)

    @pl.when(k == 0)
    def _():
        acc_ref[...] = jnp.zeros_like(acc_ref)

    x_in = x_ref[...]
    cdt = w1_ref.dtype

    h = jnp.dot(x_in.astype(cdt), w1_ref[...],
                preferred_element_type=jnp.float32)
    h = jnp.maximum(h + b1_ref[...], 0.0).astype(cdt)
    acc_ref[...] += jnp.dot(h, w2_ref[...], preferred_element_type=jnp.float32)

    @pl.when(k == pl.num_programs(1) - 1)
    def _():
        out = acc_ref[...] + b2_ref[...]
        y = out + x_in.astype(jnp.float32)
        mean = jnp.mean(y, axis=-1, keepdims=True)
        cent = y - mean
        var = jnp.mean(cent * cent, axis=-1, keepdims=True)
        y_norm = cent * jax.lax.rsqrt(var + 1e-5)
        o_ref[...] = (y_norm * g_ref[...] + beta_ref[...]).astype(o_ref.dtype)


# --------------------------------------------------------------------------
# Tiling / VMEM configuration (generation-aware)
# --------------------------------------------------------------------------
def _choose_config(M, d_model, d_ff, x_itemsize, w_itemsize, out_itemsize,
                   tm_req=None, d_ff_chunk=None):
    cap = _tpu_vmem_capacity_bytes()
    # leave headroom for Mosaic internal scratch (important on v7x's 64 MiB)
    vmem_limit = max(32 * 1024 * 1024,
                     min(cap - 12 * 1024 * 1024, int(cap * 0.82)))
    if tm_req is None:
        tm_req = 1024 if cap >= 96 * 1024 * 1024 else 512   # v5e/v6e vs v7x

    M8 = _round_up(max(M, 1), 8)
    # cap the tile so small problems still get >=2 grid steps (megacore)
    tm_two = _round_up(-(-M8 // 2), 8)

    small_vecs = (3 * d_model + d_ff) * 4   # b1,b2,gamma,beta (f32, 1 buffer)
    margin = 2 * 1024 * 1024

    # resident-weight path budget (weights single-buffered)
    resident_w = 2 * d_model * d_ff * w_itemsize + small_vecs
    per_row_res = (2 * d_model * x_itemsize        # x double buffer
                   + 2 * d_model * out_itemsize    # out double buffer
                   + d_ff * 4 + d_ff * w_itemsize  # f32 hidden + bf16 rebind
                   + 6 * d_model * 4)              # residual / LN f32 temps
    budget_res = vmem_limit - resident_w - margin
    tm_fit_res = (budget_res // per_row_res) if budget_res > 0 else 0

    use_chunked = (d_ff_chunk is not None) or (tm_fit_res < 64)

    if not use_chunked:
        tm = max(8, (min(tm_req, tm_fit_res, tm_two) // 8) * 8)
        return dict(chunked=False, tm=tm, tk=None, vmem_limit=vmem_limit)

    # chunked path: pick tk (multiple of 128) so the double-buffered W1/W2
    # chunks use roughly 40% of the scoped limit.
    if d_ff_chunk is not None:
        tk = int(d_ff_chunk)
    else:
        tk_budget = (vmem_limit * 2 // 5) // (4 * d_model * w_itemsize)
        tk = max(128, (tk_budget // 128) * 128)
        tk = min(tk, _round_up(d_ff, 128))
    chunk_w = 4 * d_model * tk * w_itemsize + small_vecs
    per_row_ch = (2 * d_model * x_itemsize
                  + 2 * d_model * out_itemsize
                  + d_model * 4                    # f32 accumulator scratch
                  + tk * 4 + tk * w_itemsize       # hidden f32 + bf16 chunk
                  + 6 * d_model * 4)
    budget_ch = vmem_limit - chunk_w - margin
    tm_fit_ch = (budget_ch // per_row_ch) if budget_ch > 0 else 8
    tm = max(8, (min(tm_req, max(tm_fit_ch, 8), tm_two) // 8) * 8)
    return dict(chunked=True, tm=tm, tk=tk, vmem_limit=vmem_limit)


# --------------------------------------------------------------------------
# Wrapper
# --------------------------------------------------------------------------
def prepare_ffn_params(w1, b1, w2, b2, gamma, beta,
                       matmul_dtype=jnp.bfloat16):
    """Cast/shape parameters ONCE (keeps the weight bf16 cast out of the
    per-call path). w1: (d_model, d_ff), w2: (d_ff, d_model)."""
    d_model, d_ff = w1.shape
    return (w1.astype(matmul_dtype),
            b1.reshape(1, d_ff).astype(jnp.float32),
            w2.astype(matmul_dtype),
            b2.reshape(1, d_model).astype(jnp.float32),
            gamma.reshape(1, d_model).astype(jnp.float32),
            beta.reshape(1, d_model).astype(jnp.float32))


def positionwise_ffn(x, params, *, tm=None, d_ff_chunk=None):
    """x: (B, S, d_model) -> (B, S, d_model)."""
    w1c, b1_2, w2c, b2_2, g_2, be_2 = params
    B, S, d_model = x.shape
    d_ff = w1c.shape[1]
    M = B * S

    cfg = _choose_config(M, d_model, d_ff,
                         x_itemsize=x.dtype.itemsize,
                         w_itemsize=w1c.dtype.itemsize,
                         out_itemsize=x.dtype.itemsize,
                         tm_req=tm, d_ff_chunk=d_ff_chunk)
    tm_v = cfg["tm"]
    vmem_limit = cfg["vmem_limit"]

    M_pad = _round_up(M, tm_v)
    x2 = x.reshape(M, d_model)
    if M_pad != M:
        x2 = jnp.pad(x2, ((0, M_pad - M), (0, 0)))

    cost = pl.CostEstimate(
        flops=4 * M_pad * d_model * d_ff,
        transcendentals=M_pad,
        bytes_accessed=(2 * M_pad * d_model * x.dtype.itemsize
                        + 2 * d_model * d_ff * w1c.dtype.itemsize),
    )

    if not cfg["chunked"]:
        out = pl.pallas_call(
            ffn_kernel,
            out_shape=jax.ShapeDtypeStruct((M_pad, d_model), x.dtype),
            grid_spec=pltpu.PrefetchScalarGridSpec(
                num_scalar_prefetch=0,
                grid=(M_pad // tm_v,),
                in_specs=[
                    pl.BlockSpec((tm_v, d_model), lambda i: (i, 0)),      # x
                    _spec((d_model, d_ff), lambda i: (0, 0), buffered=1),  # W1
                    _spec((1, d_ff), lambda i: (0, 0), buffered=1),        # b1
                    _spec((d_ff, d_model), lambda i: (0, 0), buffered=1),  # W2
                    _spec((1, d_model), lambda i: (0, 0), buffered=1),     # b2
                    _spec((1, d_model), lambda i: (0, 0), buffered=1),     # gamma
                    _spec((1, d_model), lambda i: (0, 0), buffered=1),     # beta
                ],
                out_specs=pl.BlockSpec((tm_v, d_model), lambda i: (i, 0)),
            ),
            compiler_params=pltpu.CompilerParams(
                dimension_semantics=("parallel",),
                vmem_limit_bytes=int(vmem_limit),
            ),
            cost_estimate=cost,
        )(x2, w1c, b1_2, w2c, b2_2, g_2, be_2)
    else:
        tk = cfg["tk"]
        d_ff_pad = _round_up(d_ff, tk)
        if d_ff_pad != d_ff:
            # zero-pad the hidden axis: relu(0 + 0)=0 and zero rows of W2
            # contribute nothing to the output.
            w1c = jnp.pad(w1c, ((0, 0), (0, d_ff_pad - d_ff)))
            b1_2 = jnp.pad(b1_2, ((0, 0), (0, d_ff_pad - d_ff)))
            w2c = jnp.pad(w2c, ((0, d_ff_pad - d_ff), (0, 0)))

        out = pl.pallas_call(
            ffn_kernel_chunked,
            out_shape=jax.ShapeDtypeStruct((M_pad, d_model), x.dtype),
            grid_spec=pltpu.PrefetchScalarGridSpec(
                num_scalar_prefetch=0,
                grid=(M_pad // tm_v, d_ff_pad // tk),
                in_specs=[
                    pl.BlockSpec((tm_v, d_model), lambda i, k: (i, 0)),    # x
                    pl.BlockSpec((d_model, tk), lambda i, k: (0, k)),      # W1 chunk
                    pl.BlockSpec((1, tk), lambda i, k: (0, k)),            # b1 chunk
                    pl.BlockSpec((tk, d_model), lambda i, k: (k, 0)),      # W2 chunk
                    _spec((1, d_model), lambda i, k: (0, 0), buffered=1),  # b2
                    _spec((1, d_model), lambda i, k: (0, 0), buffered=1),  # gamma
                    _spec((1, d_model), lambda i, k: (0, 0), buffered=1),  # beta
                ],
                out_specs=pl.BlockSpec((tm_v, d_model), lambda i, k: (i, 0)),
                scratch_shapes=[pltpu.VMEM((tm_v, d_model), jnp.float32)],
            ),
            compiler_params=pltpu.CompilerParams(
                dimension_semantics=("parallel", "arbitrary"),
                vmem_limit_bytes=int(vmem_limit),
            ),
            cost_estimate=cost,
        )(x2, w1c, b1_2, w2c, b2_2, g_2, be_2)

    if M_pad != M:
        out = out[:M]
    return out.reshape(B, S, d_model)


def reference_ffn(x, w1, b1, w2, b2, gamma, beta):
    h = jnp.maximum(x @ w1 + b1, 0.0)
    out = h @ w2 + b2
    y = out + x
    mean = jnp.mean(y, axis=-1, keepdims=True)
    var = jnp.var(y, axis=-1, keepdims=True)
    return (y - mean) / jnp.sqrt(var + 1e-5) * gamma + beta


if __name__ == "__main__":
    key = jax.random.PRNGKey(0)
    B, S, d_model, d_ff = 2, 8, 32, 64

    k_x, k_w1, k_b1, k_w2, k_b2 = jax.random.split(key, 5)
    x = jax.random.normal(k_x, (B, S, d_model), dtype=jnp.float32)

    # Deterministic synthetic parameters (Conv1d k=1 weights as small normals,
    # LayerNorm at PyTorch default init: gamma=1, beta=0).
    w1 = jax.random.normal(k_w1, (d_model, d_ff), dtype=jnp.float32) * 0.1
    b1 = jax.random.normal(k_b1, (d_ff,), dtype=jnp.float32) * 0.1
    w2 = jax.random.normal(k_w2, (d_ff, d_model), dtype=jnp.float32) * 0.1
    b2 = jax.random.normal(k_b2, (d_model,), dtype=jnp.float32) * 0.1
    gamma = jnp.ones((d_model,), dtype=jnp.float32)
    beta = jnp.zeros((d_model,), dtype=jnp.float32)

    ref = reference_ffn(x, w1, b1, w2, b2, gamma, beta)

    # 1) f32 matmul path: exact check against the reference.
    params_f32 = prepare_ffn_params(w1, b1, w2, b2, gamma, beta,
                                    matmul_dtype=jnp.float32)
    out_f32 = jax.block_until_ready(positionwise_ffn(x, params_f32))
    assert out_f32.shape == (B, S, d_model)
    assert jnp.allclose(out_f32, ref, atol=1e-5, rtol=1e-5)

    # 2) bf16 matmul path (production default): looser tolerance.
    params_bf16 = prepare_ffn_params(w1, b1, w2, b2, gamma, beta,
                                     matmul_dtype=jnp.bfloat16)
    out_bf16 = jax.block_until_ready(positionwise_ffn(x, params_bf16))
    assert jnp.allclose(out_bf16, ref, atol=2e-2, rtol=2e-2)

    # 3) row count not a multiple of the tile -> exercises zero-pad + slice.
    B2, S2 = 3, 5
    x_odd = jax.random.normal(key, (B2, S2, d_model), dtype=jnp.float32)
    ref_odd = reference_ffn(x_odd, w1, b1, w2, b2, gamma, beta)
    out_odd = jax.block_until_ready(positionwise_ffn(x_odd, params_f32))
    assert out_odd.shape == (B2, S2, d_model)
    assert jnp.allclose(out_odd, ref_odd, atol=1e-5, rtol=1e-5)

    # 4) d_ff-chunked accumulator path (forced here; auto-selected when the
    #    weights cannot be VMEM-resident, e.g. 2048/8192 on v7x).
    d_ff_big = 256
    kb1, kb2 = jax.random.split(k_w1, 2)
    w1b = jax.random.normal(kb1, (d_model, d_ff_big), dtype=jnp.float32) * 0.1
    b1b = jax.random.normal(kb2, (d_ff_big,), dtype=jnp.float32) * 0.1
    w2b = jax.random.normal(k_w2, (d_ff_big, d_model), dtype=jnp.float32) * 0.1
    ref_big = reference_ffn(x, w1b, b1b, w2b, b2, gamma, beta)
    params_big = prepare_ffn_params(w1b, b1b, w2b, b2, gamma, beta,
                                    matmul_dtype=jnp.float32)
    out_big = jax.block_until_ready(
        positionwise_ffn(x, params_big, d_ff_chunk=128))
    assert jnp.allclose(out_big, ref_big, atol=1e-5, rtol=1e-5)

    print("KERNEL_OK")
</pallas_src>

<mosaic_0001>
module attributes {stable_mosaic.version = 11 : i64} {
  func.func @ffn_kernel(%arg0: i32, %arg1: memref<8x32xf32, #tpu.memory_space<vmem>>, %arg2: memref<32x64xf32, #tpu.memory_space<vmem>>, %arg3: memref<1x64xf32, #tpu.memory_space<vmem>>, %arg4: memref<64x32xf32, #tpu.memory_space<vmem>>, %arg5: memref<1x32xf32, #tpu.memory_space<vmem>>, %arg6: memref<1x32xf32, #tpu.memory_space<vmem>>, %arg7: memref<1x32xf32, #tpu.memory_space<vmem>>, %arg8: memref<8x32xf32, #tpu.memory_space<vmem>>) attributes {dimension_semantics = [#tpu.dimension_semantics<parallel>], iteration_bounds = array<i64: 2>, scalar_prefetch = 0 : i64, scratch_operands = 0 : i64, tpu.core_type = #tpu.core_type<tc>, window_params = [{transform_indices = @transform_0, window_bounds = array<i64: 8, 32>}, {pipeline_mode = #tpu.pipeline_mode<synchronous>, transform_indices = @transform_1, window_bounds = array<i64: 32, 64>}, {pipeline_mode = #tpu.pipeline_mode<synchronous>, transform_indices = @transform_2, window_bounds = array<i64: 1, 64>}, {pipeline_mode = #tpu.pipeline_mode<synchronous>, transform_indices = @transform_3, window_bounds = array<i64: 64, 32>}, {pipeline_mode = #tpu.pipeline_mode<synchronous>, transform_indices = @transform_4, window_bounds = array<i64: 1, 32>}, {pipeline_mode = #tpu.pipeline_mode<synchronous>, transform_indices = @transform_5, window_bounds = array<i64: 1, 32>}, {pipeline_mode = #tpu.pipeline_mode<synchronous>, transform_indices = @transform_6, window_bounds = array<i64: 1, 32>}, {transform_indices = @transform_7, window_bounds = array<i64: 8, 32>}]} {
    %c0 = arith.constant 0 : index
    %c0_0 = arith.constant 0 : index
    %0 = vector.load %arg1[%c0, %c0_0] : memref<8x32xf32, #tpu.memory_space<vmem>>, vector<8x32xf32>
    %c0_1 = arith.constant 0 : index
    %c0_2 = arith.constant 0 : index
    %1 = vector.load %arg2[%c0_1, %c0_2] : memref<32x64xf32, #tpu.memory_space<vmem>>, vector<32x64xf32>
    %cst = arith.constant dense<0.000000e+00> : vector<8x64xf32>
    %2 = tpu.matmul %0, %1, %cst {dimension_numbers = #tpu.dot_dimension_numbers<[1], [0], [0], [1], [0, 0, 1, 1], [], []>} : vector<8x32xf32>, vector<32x64xf32>, vector<8x64xf32> -> vector<8x64xf32>
    %c0_3 = arith.constant 0 : index
    %c0_4 = arith.constant 0 : index
    %3 = vector.load %arg3[%c0_3, %c0_4] : memref<1x64xf32, #tpu.memory_space<vmem>>, vector<1x64xf32>
    %4 = vector.broadcast %3 : vector<1x64xf32> to vector<8x64xf32>
    %5 = arith.addf %2, %4 : vector<8x64xf32>
    %cst_5 = arith.constant 0.000000e+00 : f32
    %6 = vector.broadcast %cst_5 : f32 to vector<8x64xf32>
    %7 = arith.maximumf %5, %6 : vector<8x64xf32>
    %c0_6 = arith.constant 0 : index
    %c0_7 = arith.constant 0 : index
    %8 = vector.load %arg4[%c0_6, %c0_7] : memref<64x32xf32, #tpu.memory_space<vmem>>, vector<64x32xf32>
    %cst_8 = arith.constant dense<0.000000e+00> : vector<8x32xf32>
    %9 = tpu.matmul %7, %8, %cst_8 {dimension_numbers = #tpu.dot_dimension_numbers<[1], [0], [0], [1], [0, 0, 1, 1], [], []>} : vector<8x64xf32>, vector<64x32xf32>, vector<8x32xf32> -> vector<8x32xf32>
    %c0_9 = arith.constant 0 : index
    %c0_10 = arith.constant 0 : index
    %10 = vector.load %arg5[%c0_9, %c0_10] : memref<1x32xf32, #tpu.memory_space<vmem>>, vector<1x32xf32>
    %11 = vector.broadcast %10 : vector<1x32xf32> to vector<8x32xf32>
    %12 = arith.addf %9, %11 : vector<8x32xf32>
    %13 = arith.addf %12, %0 : vector<8x32xf32>
    %cst_11 = arith.constant dense<0.000000e+00> : vector<8xf32>
    %14 = vector.multi_reduction <add>, %13, %cst_11 [1] : vector<8x32xf32> to vector<8xf32>
    %15 = vector.shape_cast %14 : vector<8xf32> to vector<8x1xf32>
    %cst_12 = arith.constant 3.200000e+01 : f32
    %16 = vector.broadcast %cst_12 : f32 to vector<8x1xf32>
    %17 = arith.divf %15, %16 : vector<8x1xf32>
    %18 = vector.broadcast %17 : vector<8x1xf32> to vector<8x32xf32>
    %19 = arith.subf %13, %18 : vector<8x32xf32>
    %20 = arith.mulf %19, %19 : vector<8x32xf32>
    %cst_13 = arith.constant dense<0.000000e+00> : vector<8xf32>
    %21 = vector.multi_reduction <add>, %20, %cst_13 [1] : vector<8x32xf32> to vector<8xf32>
    %22 = vector.shape_cast %21 : vector<8xf32> to vector<8x1xf32>
    %cst_14 = arith.constant 3.200000e+01 : f32
    %23 = vector.broadcast %cst_14 : f32 to vector<8x1xf32>
    %24 = arith.divf %22, %23 : vector<8x1xf32>
    %cst_15 = arith.constant 9.99999974E-6 : f32
    %25 = vector.broadcast %cst_15 : f32 to vector<8x1xf32>
    %26 = arith.addf %24, %25 : vector<8x1xf32>
    %27 = math.rsqrt %26 : vector<8x1xf32>
    %28 = vector.broadcast %27 : vector<8x1xf32> to vector<8x32xf32>
    %29 = arith.mulf %19, %28 : vector<8x32xf32>
    %c0_16 = arith.constant 0 : index
    %c0_17 = arith.constant 0 : index
    %30 = vector.load %arg6[%c0_16, %c0_17] : memref<1x32xf32, #tpu.memory_space<vmem>>, vector<1x32xf32>
    %31 = vector.broadcast %30 : vector<1x32xf32> to vector<8x32xf32>
    %32 = arith.mulf %29, %31 : vector<8x32xf32>
    %c0_18 = arith.constant 0 : index
    %c0_19 = arith.constant 0 : index
    %33 = vector.load %arg7[%c0_18, %c0_19] : memref<1x32xf32, #tpu.memory_space<vmem>>, vector<1x32xf32>
    %34 = vector.broadcast %33 : vector<1x32xf32> to vector<8x32xf32>
    %35 = arith.addf %32, %34 : vector<8x32xf32>
    %c0_20 = arith.constant 0 : index
    %c0_21 = arith.constant 0 : index
    %36 = vector.load %arg8[%c0_20, %c0_21] : memref<8x32xf32, #tpu.memory_space<vmem>>, vector<8x32xf32>
    tpu.vector_store %arg8[%c0_20, %c0_21], %35 {strides = array<i32>} : memref<8x32xf32, #tpu.memory_space<vmem>>, vector<8x32xf32>,
    return
  }
  func.func @transform_0(%arg0: i32) -> (i32, i32) {
    %c0_i32 = arith.constant 0 : i32
    %c0_i32_0 = arith.constant 0 : i32
    return %arg0, %c0_i32 : i32, i32
  }
  func.func @transform_1(%arg0: i32) -> (i32, i32) {
    %c0_i32 = arith.constant 0 : i32
    %c0_i32_0 = arith.constant 0 : i32
    %c0_i32_1 = arith.constant 0 : i32
    return %c0_i32, %c0_i32_0 : i32, i32
  }
  func.func @transform_2(%arg0: i32) -> (i32, i32) {
    %c0_i32 = arith.constant 0 : i32
    %c0_i32_0 = arith.constant 0 : i32
    %c0_i32_1 = arith.constant 0 : i32
    return %c0_i32, %c0_i32_0 : i32, i32
  }
  func.func @transform_3(%arg0: i32) -> (i32, i32) {
    %c0_i32 = arith.constant 0 : i32
    %c0_i32_0 = arith.constant 0 : i32
    %c0_i32_1 = arith.constant 0 : i32
    return %c0_i32, %c0_i32_0 : i32, i32
  }
  func.func @transform_4(%arg0: i32) -> (i32, i32) {
    %c0_i32 = arith.constant 0 : i32
    %c0_i32_0 = arith.constant 0 : i32
    %c0_i32_1 = arith.constant 0 : i32
    return %c0_i32, %c0_i32_0 : i32, i32
  }
  func.func @transform_5(%arg0: i32) -> (i32, i32) {
    %c0_i32 = arith.constant 0 : i32
    %c0_i32_0 = arith.constant 0 : i32
    %c0_i32_1 = arith.constant 0 : i32
    return %c0_i32, %c0_i32_0 : i32, i32
  }
  func.func @transform_6(%arg0: i32) -> (i32, i32) {
    %c0_i32 = arith.constant 0 : i32
    %c0_i32_0 = arith.constant 0 : i32
    %c0_i32_1 = arith.constant 0 : i32
    return %c0_i32, %c0_i32_0 : i32, i32
  }
  func.func @transform_7(%arg0: i32) -> (i32, i32) {
    %c0_i32 = arith.constant 0 : i32
    %c0_i32_0 = arith.constant 0 : i32
    return %arg0, %c0_i32 : i32, i32
  }
}

</mosaic_0001>

<bundles_post_ra>
// kernel: tpu_custom_call.1
= control target key start
LH: loop header
LB: loop body
LE: loop exit
PB: predicated region body
PF: predicated region fallthrough
CT: control target
= control target key end

     0   :  { %12 = vsyncpa [#allocation3], 0  ;;  %s762_s0 = inlined_call_operand.vmem [shape: f32[16,32], index: 0, kind: input, shape index: {}]   ;;  %s763_s1 = inlined_call_operand.vmem [shape: f32[32,64], index: 1, kind: input, shape index: {}]   ;;  %s764_s2 = inlined_call_operand.vmem [shape: f32[1,64], index: 2, kind: input, shape index: {}]   ;;  %s765_s3 = inlined_call_operand.vmem [shape: f32[64,32], index: 3, kind: input, shape index: {}]   ;;  %s766_s4 = inlined_call_operand.vmem [shape: f32[1,32], index: 4, kind: input, shape index: {}]   ;;  %s767_s5 = inlined_call_operand.vmem [shape: f32[1,32], index: 5, kind: input, shape index: {}]   ;;  %s768_s6 = inlined_call_operand.vmem [shape: f32[1,32], index: 6, kind: input, shape index: {}]   ;;  %s769_s7 = inlined_call_operand.hbm [shape: f32[16,32], index: 7, kind: output, shape index: {}]  }
   0x1   :  { %14 = vsyncpa [#allocation3 + $0x1], 0  ;;  %s625_s24 = smov 0   ;;  %s627_s25 = smov 0  }
   0x2   :  { %s629_s26 = smov 0   ;;  %s631_s27 = smov 0  }
   0x3 LB: > { %s646_s28 = sadd.s32 4294967295, %s582_s27   ;;  %s460_s29 = sadd.s32 4294967294, %s582_s27   ;;  %s582_s27 = sphi %s631_s27, %s775_s27   ;;  %s578_s26 = sphi %s629_s26, %s774_s26   ;;  %s574_s25 = sphi %s627_s25, %s773_s25   ;;  %s570_s24 = sphi %s625_s24, %s772_s24  }
   0x4   : > { %s650_s30 = sadd.s32 1, %s582_s27   ;;  %s179_s8 = sadd.s32 1, %s578_s26 }
   0x5   : > { %s176_s9 = ssub.s32 %s582_s27, %s650_s30  ;;  %p189_p0 = scmp.ne.s32.totalorder %s578_s26, %s574_s25 }
   0x6   : > { %p177_p1 = scmp.eq.s32.totalorder %s176_s9, 0  ;;  %p190_p2 = scmp.eq.s32.totalorder %s646_s28, 1 }
   0x7   : > { %p195_p3 = scmp.ne.s32.totalorder %s574_s25, %s570_s24  ;;  %p196_p4 = scmp.eq.s32.totalorder %s460_s29, 1 }
   0x8   : > { %s661_s10 = scalar_select %p177_p1, %s578_s26, %s179_s8  }
   0x9   : > { %p663_p5 = por %p190_p2, %p189_p0  ;;  %p667_p6 = por %p196_p4, %p195_p3 }
   0xa   : > { %p463_p7 = scmp.ge.s32.totalorder %s582_s27, 1  ;;  %p239_p8 = scmp.lt.s32.totalorder %s582_s27, 3 }
   0xc   : > { %p240_p9 = pnand %p463_p7, %p239_p8 }
   0xd   : > { %p270_p10 = scmp.lt.s32.totalorder (!%p240_p9), %s646_s28, 1  ;;  %s267_s18 = sand.u32 (!%p240_p9), 1, %s574_s25  }
   0xe   : > { %243 = sbr.rel (%p240_p9) target bundleno = 558 (0x22e), region = 48  ;;  %s464_s19 = sshll.u32 (!%p240_p9), %s267_s18, 3 }
   0xf   : > { %s469_s20 = sshll.u32 (!%p240_p9), %s646_s28, 3  ;;  %s386_s16 = scalar_lea.sflag (!%p240_p9), [#allocation3], %s267_s18 }
  0x10   : > { %s396_s8 = scalar_lea.hbm (!%p240_p9), %s769_s7, %s469_s20 }
  0x11   : > { %s400_s15 = sshll.u32 (!%p240_p9), %s396_s8, 4  ;;  %s401_s15 = int_to_ptr.hbm [resolvable:$true] %s400_s15 }
  0x13   : > { %v278_v0 = vld [vmem:[%s763_s1 + $0x18] sm:$0xff]  ;;  %v277_v1 = vld [vmem:[%s763_s1 + $0x10] sm:$0xff]  ;;  %v276_v4 = vld [vmem:[%s763_s1 + $0x8] sm:$0xff]  ;;  %s271_s23 = scalar_select %p270_p10, %s646_s28, 1  ;;  %vm283_vm0 = vcmask 261120   ;;  %vm320_vm1 = vcmask 523264  }
  0x14   : > { %299 = vmatpush.msra.mxu0 %v278_v0  ;;  %v315_v2 = vld [vmem:[%s765_s3 + $0x38] sm:$0xff]  ;;  %v314_v3 = vld [vmem:[%s765_s3 + $0x30] sm:$0xff]  ;;  %v313_v5 = vld [vmem:[%s765_s3 + $0x28] sm:$0xff]  ;;  %v584_v22 = vmov 32.0  }
  0x15   : > { %332 = vmatpush.msra.mxu1 %v315_v2  ;;  %v275_v6 = vld [vmem:[%s763_s1] sm:$0xff]  ;;  %s465_s14 = sshll.u32 %s271_s23, 3  ;;  %v311_v9 = vld [vmem:[%s765_s3 + $0x18] sm:$0xff]  ;;  %v310_v10 = vld [vmem:[%s765_s3 + $0x10] sm:$0xff]  ;;  %516 = vrcp.f32 %v584_v22 }
  0x16   : > { %300 = vmatpush.msra.mxu0 %v277_v1  ;;  %s273_s17 = scalar_lea.vmem %s762_s0, %s465_s14  ;;  %v312_v7 = vld [vmem:[%s765_s3 + $0x20] sm:$0xff]  ;;  %v309_v11 = vld [vmem:[%s765_s3 + $0x8] sm:$0xff]  ;;  %s269_s14 = scalar_lea.vmem [#allocation2], %s464_s19 }
  0x17   : > { %333 = vmatpush.msra.mxu1 %v314_v3  ;;  %v274_v8 = vld [vmem:[%s273_s17] sm:$0xff]  ;;  %s398_s28 = sshll.u32 %s269_s14, 4  ;;  %s534_s17 = sshra.s32 %s401_s15, 4  ;;  %s399_s28 = int_to_ptr.vmem [resolvable:$true] %s398_s28  ;;  %s535_s17 = int_to_ptr.hbm [resolvable:$true] %s534_s17 }
  0x18   : > { %301 = vmatpush.msra.mxu0 %v276_v4  ;;  %v308_v12 = vld [vmem:[%s765_s3] sm:$0xff]  ;;  %s536_s20 = scalar_lea.hbm %s535_s17, 8  ;;  %s540_s19 = scalar_lea.hbm %s769_s7, 16 }
  0x19   : > { %334 = vmatpush.msra.mxu1 %v313_v5  ;;  %v512_v13 = vld [vmem:[%s764_s2] ss:$0 sm:$0xff]  ;;  %p537_p11 = scmp.ne.s32.totalorder %s535_s17, %s536_s20  ;;  %p541_p0 = scmp.lt.s32.totalorder %s535_s17, %s769_s7 }
  0x1a   : > { %302 = vmatpush.msra.mxu0 %v275_v6  ;;  %v513_v17 = vld [vmem:[%s766_s4] ss:$0 sm:$0xff]  ;;  %p542_p1 = scmp.lt.s32.totalorder %s540_s19, %s536_s20 }
  0x1b   : > { %466 = vmatmul.msk.f32.vlgmr.msra.gmra.mxu0 %vm283_vm0, %v274_v8  ;;  %335 = vmatpush.msra.mxu1 %v312_v7  ;;  %v517_v23 = vpop.eup %516  ;;  %v514_v43 = vld [vmem:[%s767_s5] ss:$0 sm:$0xff]  ;;  %p538_p12 = pnand %p537_p11, %p663_p5 }
  0x1c   : > { %v349_v24 = vmul.f32 32.0, %v517_v23  ;;  %vm353_vm2 = vweird.f32 %v517_v23  ;;  %v515_v46 = vld [vmem:[%s768_s6] ss:$0 sm:$0xff]  ;;  %p543_p2 = por %p542_p1, %p541_p0 }
  0x1d   : > { %336 = vmatpush.msra.mxu1 %v311_v9  ;;  %p539_p13 = pneg %p538_p12 }
  0x1e   : > { %v350_v25 = vsub.f32 1.0, %v349_v24 }
  0x1f   : > { %337 = vmatpush.msra.mxu1 %v310_v10  ;;  %p544_p3 = pnand %p543_p2, %p539_p13 }
  0x20   : > { %v351_v26 = vmul.f32 %v517_v23, %v350_v25 }
  0x21   : > { %338 = vmatpush.msra.mxu1 %v309_v11 }
  0x22   : > { %v352_v27 = vadd.f32 %v517_v23, %v351_v26 }
  0x23   : > { %339 = vmatpush.msra.mxu1 %v308_v12 }
  0x24   : > { %v354_v28 = vsel %vm353_vm2, %v517_v23, %v352_v27 }
  0x98   : > { %v304_v14 = vpop.f32.mrf.mxu0 }
  0x99   : > { %v305_v15 = vadd.f32 %v512_v13, %v304_v14 }
  0x9b   : > { %v307_v16 = vmax.f32 %v305_v15, 0.0 }
  0x9d   : > { %467 = vmatmul.msk.f32.vlgmr.msra.gmra.mxu1 %vm320_vm1, %v307_v16 }
 0x11a   : > { %v341_v18 = vpop.f32.mrf.mxu1 }
 0x11b   : > { %v342_v19 = vadd.f32 %v513_v17, %v341_v18 }
 0x11d   : > { %v344_v20 = vadd.f32 %v342_v19, %v274_v8 }
 0x11f   : > { %v345_v21 = vsel %vm283_vm0, %v344_v20, 0.0 }
 0x120   : > { %346 = vadd.xlane.f32.xlu0 %v345_v21 }
 0x193   : > { %v347_v29 = vpop.xlane.xlu0 %346 }
 0x194   : > { %v355_v30 = vmul.f32 %v354_v28, %v347_v29 }
 0x196   : > { %v356_v31 = vsub.f32 %v344_v20, %v355_v30 }
 0x198   : > { %v357_v32 = vmul.f32 %v356_v31, %v356_v31 }
 0x19a   : > { %v358_v33 = vsel %vm283_vm0, %v357_v32, 0.0 }
 0x19b   : > { %359 = vadd.xlane.f32.xlu0 %v358_v33 }
 0x20e   : > { %v360_v34 = vpop.xlane.xlu0 %359 }
 0x20f   : > { %v361_v35 = vmul.f32 %v360_v34, %v354_v28 }
 0x211   : > { %v362_v36 = vadd.f32 1e-05, %v361_v35 }
 0x213   : > { %518 = vrsqrt.f32 %v362_v36  ;;  %vm369_vm4 = vweird.f32 %v362_v36 }
 0x219   : > { %v519_v37 = vpop.eup %518 }
 0x21a   : > { %v364_v38 = vmul.f32 %v519_v37, %v362_v36  ;;  %vm370_vm3 = vweird.f32 %v519_v37 }
 0x21b   : > { %vm371_vm5 = vmor %vm369_vm4, %vm370_vm3 }
 0x21c   : > { %v365_v39 = vmul.f32 %v519_v37, %v364_v38 }
 0x21e   : > { %v366_v40 = vmul.f32 0.5, %v365_v39 }
 0x220   : > { %v367_v41 = vsub.f32 1.5, %v366_v40 }
 0x222   : > { %v368_v42 = vmul.f32 %v519_v37, %v367_v41 }
 0x224   : > { %v372_v44 = vsel %vm371_vm5, %v519_v37, %v368_v42 }
 0x225   : > { %v373_v45 = vmul.f32 %v372_v44, %v356_v31 }
 0x227   : > { %v378_v47 = vmul.f32 %v514_v43, %v373_v45 }
 0x229   : > { %v383_v48 = vadd.f32 %v515_v46, %v378_v47 }
 0x22b   : > { %384 = vst.msk [vmem:[%s269_s14] sm:$0xff] %vm283_vm0, %v383_v48 }
 0x22c   : > { %547 = shalt.err (!%p544_p3)
}
 0x22d   : > { %472 = dma.vmem_to_hbm [thread:$0]  (%p663_p5), %s399_s28, 128, %s401_s15, %s386_s16  }
 0x22e PF: > { %p478_p4 = scmp.ge.s32.totalorder %s582_s27, 2  ;;  %s412_s18 = sand.u32 1, %s570_s24  }
 0x22f   : > { %s413_s8 = scalar_lea.sflag [#allocation3], %s412_s18 }
 0x230   : > { %p475_p7 = pnand %p478_p4, %p667_p6 }
 0x232   : > { %p476_p8 = pneg %p475_p7 }
 0x234   : > { %565 = dma.done.wait (%p476_p8), %s413_s8, 128  }
 0x235   : > { %567 = vsyncadd (%p476_p8), %s413_s8, 4294967168  ;;  %p17_p9 = scmp.ge.s32.totalorder %s650_s30, 4   ;;  %s772_s24 = smov %s574_s25 }
 0x236   : > { %s773_s25 = smov %s578_s26  ;;  %s774_s26 = smov %s661_s10 }
 0x237   : > { %s775_s27 = smov %s650_s30  ;;  %19 = sbr.rel (!%p17_p9) target bundleno = 3 (0x3), region = 83 }
 0x23c   :  { %419 = vsyncpa [#allocation3], 1 }
 0x23d   :  { %421 = vsyncpa [#allocation3 + $0x1], 1 }

</bundles_post_ra>
